<compile_context>
chip_gen: v7x
topology: tpu7x:2x2x1
jax: 0.10.0
libtpu: 0.0.40
codegen_flags: <defaults>
</compile_context>

<pallas_src>
import math
import numpy as np
import jax
import jax.numpy as jnp
from jax.experimental import pallas as pl
from jax.experimental.pallas import tpu as pltpu


def _pos_enc_kernel(x_ref, mask_ref, tri_ref, pe_ref, o_ref):
    # x_ref:    (R, D)         f32   -- R = TB*S (TB batch rows flattened row-major)
    # mask_ref: (TB, S_pad)    int32 -- 1 = pad, 0 = token (padded cols are 1)
    # tri_ref:  (S_pad, S_pad) bf16  -- strict-upper "precedes" matrix (constant)
    # pe_ref:   (S_pad, D)     f32   -- first S rows of the PE table (zero-padded)
    # o_ref:    (R, D)         f32
    R, D = x_ref.shape
    TB, S_pad = mask_ref.shape
    S = R // TB

    nonpad = 1.0 - mask_ref[...].astype(jnp.float32)              # (TB, S_pad)

    # Exclusive count of preceding non-pad tokens per row: one (TB, S_pad) x
    # (S_pad, S_pad) MXU matmul.  0/1 operands are exact in bf16; f32 accumulation
    # keeps counts (<= 500) exact.
    pos_f = jnp.dot(nonpad.astype(jnp.bfloat16), tri_ref[...],
                    preferred_element_type=jnp.float32)            # (TB, S_pad)
    pos = (pos_f * nonpad).astype(jnp.int32)                       # pads -> position 0

    pos_s = pos if S == S_pad else pos[:, :S]                      # (TB, S)

    # One-hot gather: pe_use[r, :] = pe[pos[r], :].  Build the one-hot with a
    # broadcasted compare (no explicit lane->sublane transpose of pos), flatten
    # the leading dims, and use a plain 2-D MXU matmul.
    lidx = jax.lax.broadcasted_iota(jnp.int32, (TB, S, S_pad), 2)  # (TB, S, S_pad)
    gather_dtype = jnp.bfloat16 if S_pad >= 256 else jnp.float32
    onehot = (pos_s[:, :, None] == lidx).astype(gather_dtype)      # (TB, S, S_pad)
    onehot = onehot.reshape(R, S_pad)                              # (R, S_pad)

    if S_pad >= 256:
        # Long-sequence path: bf16 hi/lo split of the f32 PE table -> two bf16
        # MXU passes instead of a multi-pass f32 matmul (keeps us HBM-bound).
        pe_f32 = pe_ref[...]
        pe_hi = pe_f32.astype(jnp.bfloat16)
        pe_lo = (pe_f32 - pe_hi.astype(jnp.float32)).astype(jnp.bfloat16)
        pe_use = (jnp.dot(onehot, pe_hi, preferred_element_type=jnp.float32)
                  + jnp.dot(onehot, pe_lo, preferred_element_type=jnp.float32))
    else:
        # Short-sequence path: f32 one-hot x f32 table -> bit-exact gathered rows.
        pe_use = jnp.dot(onehot, pe_ref[...],
                         preferred_element_type=jnp.float32)       # (R, D)

    o_ref[...] = (x_ref[...] + pe_use).astype(o_ref.dtype)


def make_pe_table(dim, max_len=500):
    # Mirrors the torch buffer construction (assumes even dim, as the module does).
    position = jnp.arange(max_len, dtype=jnp.float32)[:, None]            # (L, 1)
    div_term = jnp.exp(jnp.arange(0, dim, 2, dtype=jnp.float32)
                       * (-math.log(10000.0) / dim))                       # (D/2,)
    pe = jnp.zeros((max_len, dim), jnp.float32)
    pe = pe.at[:, 0::2].set(jnp.sin(position * div_term))
    pe = pe.at[:, 1::2].set(jnp.cos(position * div_term))
    return pe


def _vmem_budget():
    """(TB-selection budget, vmem_limit_bytes), derived per chip generation."""
    cap = 64 * 1024 * 1024                 # conservative fallback = v7x physical VMEM
    try:
        info_cap = int(pltpu.get_tpu_info().vmem_capacity_bytes)
        if info_cap >= (16 << 20):
            cap = info_cap                 # 128 MiB on v5e/v6e, 64 MiB on v7x
    except Exception:
        pass
    budget = int(cap * 0.70)               # our own estimate; >=20% headroom for
    limit = int(cap * 0.85)                # compiler scratch / vreg spills
    return budget, limit


def _step_footprint_bytes(tb, S, S_pad, D, x_itemsize):
    R = tb * S
    return (4 * R * D * x_itemsize        # x + out blocks, double-buffered
            + 2 * tb * S_pad * 4          # mask block (int32), double-buffered
            + 2 * S_pad * S_pad * 2       # tri constant (bf16), double-buffered
            + 2 * S_pad * D * 4           # pe slice (f32), double-buffered
            + 2 * R * S_pad * 4           # one-hot (+ compare temporary)
            + R * D * 4                   # gathered pe rows
            + 4 * tb * S_pad * 4)         # nonpad / pos temporaries


def _pick_rows_per_step(B, S, D, x_itemsize, budget_bytes):
    """Largest divisor TB of B that fits the budget, keeping G = B/TB >= 2 when
    B >= 2 so the 'parallel' batch axis can shard across v7x's 2 TensorCores."""
    S_pad = ((S + 7) // 8) * 8
    max_tb = B if B < 2 else max(1, B // 2)
    best = 1
    for tb in range(1, max_tb + 1):
        if B % tb:
            continue
        if _step_footprint_bytes(tb, S, S_pad, D, x_itemsize) <= budget_bytes:
            best = tb
    return best


def positional_encoding_forward(x, mask, pe, *, rows_per_step=None):
    """x: (B, S, D) f32, mask: (B, S) bool (True = pad), pe: (L, D) f32."""
    B, S, D = x.shape
    L = pe.shape[0]
    if S > L:
        raise ValueError(f"seq_len {S} exceeds max_len {L}")

    S_pad = ((S + 7) // 8) * 8
    x_itemsize = jnp.dtype(x.dtype).itemsize
    budget, vmem_limit = _vmem_budget()

    TB = (_pick_rows_per_step(B, S, D, x_itemsize, budget)
          if rows_per_step is None else rows_per_step)
    assert B % TB == 0, "rows_per_step must divide the batch size"
    G = B // TB          # grid steps
    R = TB * S           # flattened rows per step

    # PE slice: positions are always < S, so only the first S rows are needed;
    # zero-pad to a multiple of 8 sublanes.
    pe_s = pe[:S]
    if S_pad > S:
        pe_s = jnp.concatenate([pe_s, jnp.zeros((S_pad - S, D), pe.dtype)], axis=0)

    # (S_pad, S_pad) strict-upper "precedes" matrix: pos = nonpad @ tri.
    idx = jnp.arange(S_pad)
    tri = (idx[:, None] < idx[None, :]).astype(jnp.bfloat16)

    x_g = x.reshape(G, R, D)

    # Pad the (cheap) mask to S_pad with "pad" (1) so padded columns contribute 0.
    mask_i = mask.astype(jnp.int32)
    if S_pad > S:
        mask_i = jnp.concatenate(
            [mask_i, jnp.ones((B, S_pad - S), jnp.int32)], axis=1)
    mask_g = mask_i.reshape(G, TB, S_pad)

    out = pl.pallas_call(
        _pos_enc_kernel,
        out_shape=jax.ShapeDtypeStruct((G, R, D), x.dtype),
        grid_spec=pltpu.PrefetchScalarGridSpec(
            num_scalar_prefetch=0,
            grid=(G,),
            in_specs=[
                pl.BlockSpec((None, R, D), lambda g: (g, 0, 0)),      # x rows
                pl.BlockSpec((None, TB, S_pad), lambda g: (g, 0, 0)), # mask rows
                pl.BlockSpec((S_pad, S_pad), lambda g: (0, 0)),       # tri (constant)
                pl.BlockSpec((S_pad, D), lambda g: (0, 0)),           # pe slice (constant)
            ],
            out_specs=pl.BlockSpec((None, R, D), lambda g: (g, 0, 0)),
        ),
        compiler_params=pltpu.CompilerParams(
            dimension_semantics=("parallel",),     # batch steps are independent
            vmem_limit_bytes=vmem_limit),
    )(x_g, mask_g, tri, pe_s)

    return out.reshape(B, S, D)


def _reference_forward(x, mask, pe):
    # Pure-JAX reference of the torch forward (eval-mode dropout).
    nonpad = (~mask).astype(jnp.int32)
    pos = jnp.cumsum(nonpad, axis=1) - nonpad          # exclusive cumsum of non-pad
    pos = jnp.where(mask, 0, pos)
    pe_use = pe[pos]                                   # (B, S, D)
    return x + pe_use


if __name__ == "__main__":
    MAX_LEN = 500

    # --- Case 1: auto TB selection (B=2 -> TB=1, G=2) -------------------------
    B, S, D = 2, 8, 32
    key = jax.random.PRNGKey(0)
    kx, km = jax.random.split(key)
    x = jax.random.normal(kx, (B, S, D), dtype=jnp.float32)
    mask = jnp.array(
        [[0, 0, 1, 0, 0, 0, 1, 1],
         [0, 1, 0, 0, 1, 0, 0, 1]], dtype=bool)        # True = pad
    pe = make_pe_table(D, MAX_LEN)

    out = jax.block_until_ready(positional_encoding_forward(x, mask, pe))
    ref = _reference_forward(x, mask, pe)
    np.testing.assert_allclose(np.asarray(out), np.asarray(ref),
                               rtol=1e-5, atol=1e-5)

    # --- Case 2: multi-row grid steps (B = 4, TB forced to 2) -----------------
    B2 = 4
    kx2, km2 = jax.random.split(jax.random.PRNGKey(0), 2)
    x2 = jax.random.normal(kx2, (B2, S, D), dtype=jnp.float32)
    mask2 = jax.random.bernoulli(km2, 0.3, (B2, S))
    out2 = jax.block_until_ready(
        positional_encoding_forward(x2, mask2, pe, rows_per_step=2))
    ref2 = _reference_forward(x2, mask2, pe)
    np.testing.assert_allclose(np.asarray(out2), np.asarray(ref2),
                               rtol=1e-5, atol=1e-5)

    print("KERNEL_OK")
</pallas_src>

<mosaic_0001>
module attributes {stable_mosaic.version = 11 : i64} {
  func.func @_pos_enc_kernel(%arg0: i32, %arg1: memref<1x8x32xf32, #tpu.memory_space<vmem>>, %arg2: memref<1x1x8xi32, #tpu.memory_space<vmem>>, %arg3: memref<8x8xbf16, #tpu.memory_space<vmem>>, %arg4: memref<8x32xf32, #tpu.memory_space<vmem>>, %arg5: memref<1x8x32xf32, #tpu.memory_space<vmem>>) attributes {dimension_semantics = [#tpu.dimension_semantics<parallel>], iteration_bounds = array<i64: 2>, scalar_prefetch = 0 : i64, scratch_operands = 0 : i64, tpu.core_type = #tpu.core_type<tc>, window_params = [{transform_indices = @transform_0, window_bounds = array<i64: 1, 8, 32>}, {transform_indices = @transform_1, window_bounds = array<i64: 1, 1, 8>}, {pipeline_mode = #tpu.pipeline_mode<synchronous>, transform_indices = @transform_2, window_bounds = array<i64: 8, 8>}, {pipeline_mode = #tpu.pipeline_mode<synchronous>, transform_indices = @transform_3, window_bounds = array<i64: 8, 32>}, {transform_indices = @transform_4, window_bounds = array<i64: 1, 8, 32>}]} {
    %c0 = arith.constant 0 : index
    %c0_0 = arith.constant 0 : index
    %c0_1 = arith.constant 0 : index
    %0 = vector.load %arg2[%c0, %c0_0, %c0_1] : memref<1x1x8xi32, #tpu.memory_space<vmem>>, vector<1x1x8xi32>
    %1 = vector.shape_cast %0 : vector<1x1x8xi32> to vector<1x8xi32>
    %2 = arith.sitofp %1 : vector<1x8xi32> to vector<1x8xf32>
    %cst = arith.constant 1.000000e+00 : f32
    %3 = vector.broadcast %cst : f32 to vector<1x8xf32>
    %4 = arith.subf %3, %2 : vector<1x8xf32>
    %5 = arith.truncf %4 : vector<1x8xf32> to vector<1x8xbf16>
    %c0_2 = arith.constant 0 : index
    %c0_3 = arith.constant 0 : index
    %6 = vector.load %arg3[%c0_2, %c0_3] : memref<8x8xbf16, #tpu.memory_space<vmem>>, vector<8x8xbf16>
    %cst_4 = arith.constant dense<0.000000e+00> : vector<1x8xf32>
    %7 = tpu.matmul %5, %6, %cst_4 {dimension_numbers = #tpu.dot_dimension_numbers<[1], [0], [0], [1], [0, 0, 1, 1], [], []>} : vector<1x8xbf16>, vector<8x8xbf16>, vector<1x8xf32> -> vector<1x8xf32>
    %8 = arith.mulf %7, %4 : vector<1x8xf32>
    %9 = arith.fptosi %8 : vector<1x8xf32> to vector<1x8xi32>
    %10 = tpu.iota {dimensions = array<i32: 2>} : vector<1x8x8xi32>
    %11 = vector.shape_cast %9 : vector<1x8xi32> to vector<1x8x1xi32>
    %12 = vector.broadcast %11 : vector<1x8x1xi32> to vector<1x8x8xi32>
    %13 = arith.cmpi eq, %12, %10 : vector<1x8x8xi32>
    %14 = arith.extui %13 : vector<1x8x8xi1> to vector<1x8x8xi32>
    %15 = arith.sitofp %14 : vector<1x8x8xi32> to vector<1x8x8xf32>
    %16 = vector.shape_cast %15 : vector<1x8x8xf32> to vector<8x8xf32>
    %c0_5 = arith.constant 0 : index
    %c0_6 = arith.constant 0 : index
    %17 = vector.load %arg4[%c0_5, %c0_6] : memref<8x32xf32, #tpu.memory_space<vmem>>, vector<8x32xf32>
    %cst_7 = arith.constant dense<0.000000e+00> : vector<8x32xf32>
    %18 = tpu.matmul %16, %17, %cst_7 {dimension_numbers = #tpu.dot_dimension_numbers<[1], [0], [0], [1], [0, 0, 1, 1], [], []>} : vector<8x8xf32>, vector<8x32xf32>, vector<8x32xf32> -> vector<8x32xf32>
    %c0_8 = arith.constant 0 : index
    %c0_9 = arith.constant 0 : index
    %c0_10 = arith.constant 0 : index
    %19 = vector.load %arg1[%c0_8, %c0_9, %c0_10] : memref<1x8x32xf32, #tpu.memory_space<vmem>>, vector<1x8x32xf32>
    %20 = vector.shape_cast %19 : vector<1x8x32xf32> to vector<8x32xf32>
    %21 = arith.addf %20, %18 : vector<8x32xf32>
    %c0_11 = arith.constant 0 : index
    %c0_12 = arith.constant 0 : index
    %c0_13 = arith.constant 0 : index
    %22 = vector.load %arg5[%c0_11, %c0_12, %c0_13] : memref<1x8x32xf32, #tpu.memory_space<vmem>>, vector<1x8x32xf32>
    %23 = vector.shape_cast %22 : vector<1x8x32xf32> to vector<8x32xf32>
    %24 = vector.shape_cast %21 : vector<8x32xf32> to vector<1x8x32xf32>
    tpu.vector_store %arg5[%c0_11, %c0_12, %c0_13], %24 {strides = array<i32>} : memref<1x8x32xf32, #tpu.memory_space<vmem>>, vector<1x8x32xf32>,
    return
  }
  func.func @transform_0(%arg0: i32) -> (i32, i32, i32) {
    %c0_i32 = arith.constant 0 : i32
    %c0_i32_0 = arith.constant 0 : i32
    %c0_i32_1 = arith.constant 0 : i32
    return %arg0, %c0_i32, %c0_i32_0 : i32, i32, i32
  }
  func.func @transform_1(%arg0: i32) -> (i32, i32, i32) {
    %c0_i32 = arith.constant 0 : i32
    %c0_i32_0 = arith.constant 0 : i32
    %c0_i32_1 = arith.constant 0 : i32
    return %arg0, %c0_i32, %c0_i32_0 : i32, i32, i32
  }
  func.func @transform_2(%arg0: i32) -> (i32, i32) {
    %c0_i32 = arith.constant 0 : i32
    %c0_i32_0 = arith.constant 0 : i32
    %c0_i32_1 = arith.constant 0 : i32
    return %c0_i32, %c0_i32_0 : i32, i32
  }
  func.func @transform_3(%arg0: i32) -> (i32, i32) {
    %c0_i32 = arith.constant 0 : i32
    %c0_i32_0 = arith.constant 0 : i32
    %c0_i32_1 = arith.constant 0 : i32
    return %c0_i32, %c0_i32_0 : i32, i32
  }
  func.func @transform_4(%arg0: i32) -> (i32, i32, i32) {
    %c0_i32 = arith.constant 0 : i32
    %c0_i32_0 = arith.constant 0 : i32
    %c0_i32_1 = arith.constant 0 : i32
    return %arg0, %c0_i32, %c0_i32_0 : i32, i32, i32
  }
}

</mosaic_0001>

<bundles_post_ra>
// kernel: tpu_custom_call.1
= control target key start
LH: loop header
LB: loop body
LE: loop exit
PB: predicated region body
PF: predicated region fallthrough
CT: control target
= control target key end

     0   :  { %9 = vsyncpa [#allocation3], 0  ;;  %s960_s0 = inlined_call_operand.hbm [shape: f32[2,8,32], index: 0, kind: input, shape index: {}]   ;;  %s961_s1 = inlined_call_operand.vmem [shape: s32[2,1,8], index: 1, kind: input, shape index: {}]   ;;  %s962_s2 = inlined_call_operand.hbm [shape: bf16[8,8], index: 2, kind: input, shape index: {}]   ;;  %s963_s3 = inlined_call_operand.vmem [shape: f32[8,32], index: 3, kind: input, shape index: {}]   ;;  %s964_s4 = inlined_call_operand.hbm [shape: f32[2,8,32], index: 4, kind: output, shape index: {}]  }
   0x1   :  { %11 = vsyncpa [#allocation3 + $0x1], 0 }
   0x2   :  { %12 = vsyncpa [#allocation6], 0 }
   0x3   :  { %13 = vsyncpa [#allocation4], 0 }
   0x4   :  { %15 = vsyncpa [#allocation4 + $0x1], 0  ;;  %s742_s15 = smov 0   ;;  %s744_s16 = smov 0  }
   0x5   :  { %s746_s17 = smov 0   ;;  %s748_s18 = smov 0  }
   0x6 LB: > { %s763_s19 = sadd.s32 4294967295, %s710_s18   ;;  %s489_s20 = sadd.s32 4294967294, %s710_s18   ;;  %s710_s18 = sphi %s748_s18, %s988_s18   ;;  %s706_s17 = sphi %s746_s17, %s987_s17   ;;  %s702_s16 = sphi %s744_s16, %s986_s16   ;;  %s698_s15 = sphi %s742_s15, %s985_s15  }
   0x7   : > { %p41_p0 = scmp.ne.s32.totalorder %s702_s16, %s698_s15  ;;  %p965_p1 = scmp.eq.s32.totalorder %s763_s19, 0 }
   0x8   : > { %p139_p3 = scmp.eq.s32.totalorder %s489_s20, 1  ;;  %p490_p5 = scmp.ge.s32.totalorder %s710_s18, 1 }
   0x9   : > { %p772_p4 = por %p965_p1, %p41_p0  ;;  %p146_p7 = scmp.lt.s32.totalorder %s710_s18, 3 }
   0xa   : > { %p777_p6 = por %p139_p3, %p41_p0  ;;  %s712_s24 = smov [#allocation5]  }
   0xb   : > { %s968_s21 = scalar_select %p772_p4, 1, 0 }
   0xc   : > { %s969_s22 = scalar_select %p777_p6, 1, 0 }
   0xd   : > { %p782_p8 = pnand %p490_p5, %p146_p7  ;;  %s159_s25 = sshll.u32 %s712_s24, 4  ;;  %s160_s25 = int_to_ptr.vmem [resolvable:$true] %s159_s25 }
   0xe   : > { %s790_s26 = sadd.s32 1, %s710_s18   ;;  %s28_s30 = sadd.s32 1, %s706_s17 }
   0xf   : > { %s970_s23 = scalar_select %p782_p8, 1, 0 }
  0x10   : > { %p531_p10 = pneg %p782_p8  ;;  %s25_s28 = ssub.s32 %s710_s18, %s790_s26 }
  0x11   : > { %p800_p12 = scmp.eq.s32.totalorder %s25_s28, 0  ;;  %s582_s7 = scalar_lea.hbm %s962_s2, 64 }
  0x12   : > { %p794_p11 = pnand %p531_p10, %p965_p1  ;;  %p583_p0 = scmp.ne.s32.totalorder %s962_s2, %s582_s7 }
  0x13   : > { %s972_s29 = scalar_select %p800_p12, 1, 0 }
  0x14   : > { %p584_p3 = pneg %p794_p11  ;;  %p589_p10 = scmp.lt.u32.totalorder %s582_s7, %s962_s2 }
  0x16   : > { %p585_p5 = pnand %p584_p3, %p583_p0 }
  0x18   : > { %p586_p7 = pneg %p585_p5 }
  0x1a   : > { %p591_p9 = pnand %p589_p10, %p586_p7 }
  0x1c   : > { %594 = shalt.err (!%p591_p9)
}
  0x1d   : > { %s595_s12 = scalar_lea.vmem %s160_s25, 64  ;;  %p603_p6 = scmp.lt.s32.totalorder %s160_s25, %s160_s25 }
  0x1e   : > { %p596_p1 = scmp.ne.s32.totalorder %s160_s25, %s595_s12  ;;  %p604_p4 = scmp.lt.s32.totalorder %s595_s12, %s595_s12 }
  0x20   : > { %p598_p2 = pnand %p596_p1, %p584_p3  ;;  %p605_p8 = por %p604_p4, %p603_p6 }
  0x22   : > { %p599_p13 = pneg %p598_p2 }
  0x24   : > { %p606_p12 = pnand %p605_p8, %p599_p13 }
  0x26   : > { %609 = shalt.err (!%p606_p12)
}
  0x27   : > { %534 = dma.hbm_to_vmem [thread:$0]  (!%p794_p11), %s962_s2, 64, %s160_s25, [#allocation6]  }
  0x28   : > { %p973_p1 = scmp.ne.s32.totalorder %s972_s29, 0  ;;  %p36_p2 = scmp.eq.s32.totalorder %s710_s18, 0 }
  0x29   : > { %p974_p4 = scmp.ne.s32.totalorder %s706_s17, %s702_s16  ;;  %p975_p6 = scmp.eq.s32.totalorder %s763_s19, 1 }
  0x2a   : > { %s826_s20 = scalar_select %p973_p1, %s706_s17, %s28_s30  }
  0x2b   : > { %p834_p8 = por %p975_p6, %p974_p4  ;;  %p544_p9 = scmp.lt.s32.totalorder %s710_s18, 2 }
  0x2c   : > { %s173_s27 = sand.u32 1, %s706_s17   ;;  %p977_p12 = pmov %p974_p4 }
  0x2d   : > { %s493_s28 = sshll.u32 %s173_s27, 3  ;;  %s494_s5 = sshll.u32 %s710_s18, 7 }
  0x2e   : > { %p37_p13 = por %p36_p2, %p977_p12  ;;  %s847_s25 = scalar_lea.hbm %s960_s0, %s494_s5 }
  0x2f   : > { %s177_s29 = scalar_lea.vmem [#allocation2], %s493_s28  ;;  %s174_s9 = scalar_lea.sflag [#allocation3], %s173_s27 }
  0x30   : > { %s184_s30 = sshll.u32 %s177_s29, 4  ;;  %p849_p11 = pnand %p544_p9, %p37_p13  ;;  %s853_s30 = int_to_ptr.vmem [resolvable:$true] %s184_s30 }
  0x31   : > { %s610_s10 = scalar_lea.hbm %s847_s25, 128  ;;  %s615_s13 = scalar_lea.hbm %s960_s0, 256 }
  0x32   : > { %p611_p0 = scmp.ne.s32.totalorder %s847_s25, %s610_s10  ;;  %p612_p3 = pneg %p849_p11 }
  0x33   : > { %p616_p10 = scmp.lt.u32.totalorder %s847_s25, %s960_s0  ;;  %p617_p1 = scmp.lt.u32.totalorder %s615_s13, %s610_s10 }
  0x34   : > { %p613_p5 = pnand %p612_p3, %p611_p0  ;;  %p619_p4 = scmp.lt.u32.totalorder %s610_s10, %s847_s25 }
  0x35   : > { %p618_p2 = por %p617_p1, %p616_p10 }
  0x36   : > { %p614_p7 = pneg %p613_p5 }
  0x37   : > { %p620_p6 = por %p619_p4, %p618_p2 }
  0x39   : > { %p621_p9 = pnand %p620_p6, %p614_p7 }
  0x3b   : > { %624 = shalt.err (!%p621_p9)
}
  0x3c   : > { %s625_s27 = scalar_lea.vmem %s853_s30, 128  ;;  %s713_s5 = smov [#allocation2]  }
  0x3d   : > { %p626_p12 = scmp.ne.s32.totalorder %s853_s30, %s625_s27  ;;  %s630_s6 = sshll.u32 %s713_s5, 4  ;;  %s631_s6 = int_to_ptr.vmem [resolvable:$false] %s630_s6 }
  0x3e   : > { %s632_s7 = scalar_lea.vmem %s631_s6, 256  ;;  %p633_p5 = scmp.lt.s32.totalorder %s853_s30, %s631_s6 }
  0x3f   : > { %p628_p13 = pnand %p626_p12, %p612_p3  ;;  %p634_p10 = scmp.lt.s32.totalorder %s632_s7, %s625_s27 }
  0x41   : > { %p629_p0 = pneg %p628_p13  ;;  %p635_p1 = por %p634_p10, %p633_p5 }
  0x43   : > { %p636_p2 = pnand %p635_p1, %p629_p0 }
  0x45   : > { %639 = shalt.err (!%p636_p2)
}
  0x46   : > { %538 = dma.hbm_to_vmem [thread:$0]  (!%p849_p11), %s847_s25, 128, %s853_s30, %s174_s9  }
  0x47   : > { %p979_p7 = scmp.ne.s32.totalorder %s970_s23, 0 }
  0x48   : > { %s883_s29 = sand.u32 (!%p979_p7), 1, %s702_s16   ;;  %p980_p3 = scmp.ne.s32.totalorder (!%p979_p7), %s968_s21, 0 }
  0x49   : > { %199 = sbr.rel (%p979_p7) target bundleno = 661 (0x295), region = 36  ;;  %s496_s10 = sshll.u32 (!%p979_p7), %s883_s29, 3 }
  0x4a   : > { %s202_s11 = scalar_lea.sflag (!%p979_p7), [#allocation3], %s883_s29  ;;  %s889_s12 = scalar_lea.vmem (!%p979_p7), [#allocation2], %s496_s10 }
  0x50   : > { %685 = dma.done.wait (%p980_p3), %s202_s11, 128  }
  0x51   : > { %687 = vsyncadd (%p980_p3), %s202_s11, 4294967168  ;;  %p981_p11 = scmp.eq.s32.totalorder %s763_s19, 0 }
  0x53   : > { %689 = dma.done.wait (%p981_p11), [#allocation6], 64   ;;  %p982_p4 = pmov %p981_p11 }
  0x54   : > { %p237_p6 = scmp.lt.s32.totalorder %s763_s19, 1  ;;  %v714_v0 = vmov 0.0   ;;  %vm715_vm0 = vmmov 0   ;;  %vm250_vm1 = vcmask 1043456   ;;  %v245_v1 = vld [vmem:[#allocation5] sm:$0xf]  ;;  %v296_v7 = vlaneseq }
  0x55   : > { %691 = vsyncadd (%p982_p4), [#allocation6], 4294967232  ;;  %510 = vmatprep.subr.bf16.mxu0 %v714_v0  ;;  %512 = vmatprep.mubr.msk.bf16.mxu0 %vm715_vm0, %v714_v0  ;;  %v252_v3 = vsel %vm250_vm1, %v245_v1, 0  ;;  %vm246_vm2 = vcmask 64512   ;;  %v308_v8 = vld [vmem:[%s963_s3] sm:$0xff]  ;;  %s503_s13 = sshll.u32 %s763_s19, 7 }
  0x56   : > { %s238_s23 = scalar_select %p237_p6, %s763_s19, 1  ;;  %516 = vmatprep.subr.mxu1 %v714_v0  ;;  %518 = vmatprep.mubr.msk.f32.mxu1 %vm715_vm0, %v714_v0  ;;  %v299_v9 = vshrl.u32 %v296_v7, 7  ;;  %v297_v19 = vand.u32 127, %v296_v7  ;;  %v382_v22 = vld [vmem:[%s889_s12] sm:$0xff]  ;;  %vm384_vm4 = vcmask 261120  }
  0x57   : > { %511 = vmatpush3.bf16.msra.mxu0 %v252_v3  ;;  %517 = vmatpush3.msra.mxu1 %v308_v8  ;;  %s236_s14 = scalar_lea.vmem [#allocation7], %s496_s10  ;;  %s916_s6 = scalar_lea.hbm %s964_s4, %s503_s13 }
  0x58   : > { %s239_s21 = scalar_lea.vmem %s961_s1, %s238_s23  ;;  %v300_v16 = vsub.s32 0, %v299_v9  ;;  %s400_s28 = sshll.u32 %s236_s14, 4  ;;  %s918_s28 = int_to_ptr.vmem [resolvable:$true] %s400_s28 }
  0x59   : > { %v241_v2 = vld [vmem:[%s239_s21] sm:$0x1]  ;;  %s387_s7 = scalar_lea.sflag [#allocation4], %s883_s29  ;;  %s640_s19 = scalar_lea.vmem %s918_s28, 128 }
  0x5a   : > { %v242_v4 = vcvt.s32.f32 %v241_v2  ;;  %p641_p9 = scmp.ne.s32.totalorder %s918_s28, %s640_s19  ;;  %s716_s10 = smov [#allocation7]  }
  0x5b   : > { %s644_s11 = sshll.u32 %s716_s10, 4  ;;  %s645_s11 = int_to_ptr.vmem [resolvable:$false] %s644_s11 }
  0x5c   : > { %v243_v5 = vsub.f32 1.0, %v242_v4  ;;  %p642_p12 = pnand %p641_p9, %p834_p8  ;;  %s646_s12 = scalar_lea.vmem %s645_s11, 256 }
  0x5d   : > { %p647_p0 = scmp.lt.s32.totalorder %s918_s28, %s645_s11  ;;  %p648_p5 = scmp.lt.s32.totalorder %s646_s12, %s640_s19 }
  0x5e   : > { %v244_v6 = vpack.c.bf16 %v243_v5, %v243_v5  ;;  %p643_p13 = pneg %p642_p12 }
  0x5f   : > { %p649_p10 = por %p648_p5, %p647_p0 }
  0x60   : > { %513 = vmatmul.mubr.msk.bf16.vlgmr.msra.gmra.mrb[0].mxu0 %vm246_vm2, %v244_v6 }
  0x61   : > { %p650_p1 = pnand %p649_p10, %p643_p13 }
 0x133   : > { %v288_v10 = vpop.f32.mrb[0].mxu0 }
 0x134   : > { %v294_v11 = vmul.f32 %v288_v10, %v243_v5  ;;  %v514_v12 = vpop.f32.mrb[1].mxu0 }
 0x135   : > { %v291_v13 = vpop.f32.mrb[2].mxu0 }
 0x136   : > { %v521_v14 = vtrunc.f32 %v294_v11  ;;  %v515_v15 = vpop.f32.mrb[3].mxu0 }
 0x138   : > { %v522_v17 = vcvt.f32.s32 %v521_v14 }
 0x13a   : > { %v301_v18 = vrot.slane %v522_v17, %v300_v16 }
 0x13c   : > { %303 = vbcast.lane.b32.xlu0 %v301_v18, 256 }
 0x1ae   : > { %v304_v20 = vpop.permute.xlu0 %303 }
 0x1af   : > { %vm305_vm3 = vcmp.eq.s32.totalorder %v304_v20, %v297_v19 }
 0x1b0   : > { %v500_v21 = vsel %vm305_vm3, 1.0, %v714_v0 }
 0x1b1   : > { %519 = vmatmul.mubr.msk.f32.vlgmr.msra.gmra.mrb[0].mxu1 %vm246_vm2, %v500_v21 }
 0x284   : > { %v378_v23 = vpop.f32.mrb[0].mxu1 }
 0x285   : > { %v383_v24 = vadd.f32 %v382_v22, %v378_v23  ;;  %v520_v25 = vpop.f32.mrb[1].mxu1 }
 0x287   : > { %385 = vst.msk [vmem:[%s236_s14] sm:$0xff] %vm384_vm4, %v383_v24 }
 0x288   : > { %653 = shalt.err (!%p650_p1)
}
 0x289   : > { %s654_s29 = scalar_lea.hbm %s916_s6, 128  ;;  %s658_s30 = scalar_lea.hbm %s964_s4, 256 }
 0x28a   : > { %p655_p2 = scmp.ne.s32.totalorder %s916_s6, %s654_s29  ;;  %p659_p11 = scmp.lt.u32.totalorder %s916_s6, %s964_s4 }
 0x28b   : > { %p660_p4 = scmp.lt.u32.totalorder %s658_s30, %s654_s29  ;;  %p662_p9 = scmp.lt.u32.totalorder %s654_s29, %s916_s6 }
 0x28c   : > { %p656_p7 = pnand %p655_p2, %p834_p8 }
 0x28d   : > { %p661_p6 = por %p660_p4, %p659_p11 }
 0x28e   : > { %p657_p3 = pneg %p656_p7 }
 0x28f   : > { %p663_p12 = por %p662_p9, %p661_p6 }
 0x291   : > { %p664_p13 = pnand %p663_p12, %p657_p3 }
 0x293   : > { %667 = shalt.err (!%p664_p13)
}
 0x294   : > { %529 = dma.vmem_to_hbm [thread:$0]  (%p834_p8), %s918_s28, 128, %s916_s6, %s387_s7  }
 0x295 PF: > { %s412_s9 = sand.u32 1, %s698_s15   ;;  %p983_p0 = scmp.ne.s32.totalorder %s969_s22, 0 }
 0x296   : > { %p984_p5 = scmp.ge.s32.totalorder %s710_s18, 2  ;;  %s413_s13 = scalar_lea.sflag [#allocation4], %s412_s9 }
 0x298   : > { %p540_p10 = pnand %p984_p5, %p983_p0 }
 0x29a   : > { %693 = dma.done.wait (!%p540_p10), %s413_s13, 128  }
 0x29b   : > { %695 = vsyncadd (!%p540_p10), %s413_s13, 4294967168  ;;  %p18_p1 = scmp.ge.s32.totalorder %s790_s26, 4   ;;  %s985_s15 = smov %s702_s16 }
 0x29c   : > { %s986_s16 = smov %s706_s17  ;;  %s987_s17 = smov %s826_s20 }
 0x29d   : > { %s988_s18 = smov %s790_s26  ;;  %20 = sbr.rel (!%p18_p1) target bundleno = 6 (0x6), region = 88 }
 0x2a4   :  { %418 = vsyncpa [#allocation3], 1 }
 0x2a5   :  { %420 = vsyncpa [#allocation3 + $0x1], 1 }
 0x2a6   :  { %421 = vsyncpa [#allocation6], 1 }
 0x2a7   :  { %422 = vsyncpa [#allocation4], 1 }
 0x2a8   :  { %424 = vsyncpa [#allocation4 + $0x1], 1 }

</bundles_post_ra>
